<compile_context>
chip_gen: v7x
topology: tpu7x:2x2x1
jax: 0.10.0
libtpu: 0.0.40
codegen_flags: <defaults>
</compile_context>

<pallas_src>
import functools

import jax
import jax.numpy as jnp
from jax.experimental import pallas as pl
from jax.experimental.pallas import tpu as pltpu


NEG_INF = -1e30           # finite additive causal mask (avoids -inf NaNs)
_LANE = 128


# ---------------------------------------------------------------------------
# Hardware-dependent knobs
# ---------------------------------------------------------------------------
@functools.lru_cache(maxsize=None)
def _vmem_limit_bytes():
    """Generation-specific VMEM limit: ~3/4 of physical (96 MiB on v5e/v6e,
    48 MiB on v7x), conservative fallback if the query is unavailable."""
    cap = 64 * 1024 * 1024
    try:
        info = pltpu.get_tpu_info()
        for attr in ('vmem_capacity_bytes', 'vmem_bytes', 'vmem_size_bytes'):
            val = getattr(info, attr, None)
            if val:
                cap = int(val)
                break
    except Exception:
        pass
    return int(min(cap * 3 // 4, 112 * 1024 * 1024))


def _probe_copy_kernel(x_ref, o_ref):
    o_ref[...] = x_ref[...]


@functools.lru_cache(maxsize=None)
def _single_buffer_supported():
    """Check whether pipeline_mode=pl.Buffered(1) works in this Pallas build
    (single-buffering constant weight blocks halves their VMEM footprint)."""
    try:
        spec = pl.BlockSpec((8, _LANE), lambda i: (0, 0),
                            pipeline_mode=pl.Buffered(1))
        out = pl.pallas_call(
            _probe_copy_kernel,
            out_shape=jax.ShapeDtypeStruct((8, _LANE), jnp.float32),
            grid=(1,),
            in_specs=[spec],
            out_specs=pl.BlockSpec((8, _LANE), lambda i: (0, 0)),
        )(jnp.zeros((8, _LANE), jnp.float32))
        jax.block_until_ready(out)
        return True
    except Exception:
        return False


def _const_spec(shape):
    """BlockSpec for a block whose index never changes (weights / biases)."""
    idx = lambda *_: (0,) * len(shape)
    if _single_buffer_supported():
        return pl.BlockSpec(shape, idx, pipeline_mode=pl.Buffered(1))
    return pl.BlockSpec(shape, idx)


def _pick_tile(n, candidates):
    for c in candidates:
        if n % c == 0:
            return c
    return n                                    # fall back to full extent


def _layer_norm(y, g, b, eps=1e-5):
    mu = jnp.mean(y, axis=-1, keepdims=True)
    var = jnp.mean(jnp.square(y - mu), axis=-1, keepdims=True)
    return (y - mu) * jax.lax.rsqrt(var + eps) * g + b


# ---------------------------------------------------------------------------
# Kernel 1: fused QKV projection  (rows of B*T) @ (D, 3D)
# ---------------------------------------------------------------------------
def _qkv_proj_kernel(x_ref, w_ref, b_ref, o_ref):
    o_ref[...] = (jnp.dot(x_ref[...].astype(jnp.bfloat16), w_ref[...],
                          preferred_element_type=jnp.float32)
                  + b_ref[...]).astype(o_ref.dtype)


# ---------------------------------------------------------------------------
# Kernel 2: attention per (batch, head, q-block) with hoisted causal bias
# ---------------------------------------------------------------------------
def _attention_kernel(q_ref, k_ref, v_ref, mask_ref, o_ref):
    q = q_ref[0, 0]                              # (TQ, hd) bf16
    k = k_ref[0, 0]                              # (T,  hd) bf16
    v = v_ref[0, 0]                              # (T,  hd) bf16
    hd = q.shape[-1]
    scale = jnp.float32(1.0 / (hd ** 0.5))

    # scores: contract over hd without an explicit in-kernel transpose of K
    s = jax.lax.dot_general(q, k, (((1,), (1,)), ((), ())),
                            preferred_element_type=jnp.float32) * scale
    s = s + mask_ref[...]
    s = s - jnp.max(s, axis=-1, keepdims=True)
    p = jnp.exp(s)
    p = p * pl.reciprocal(jnp.sum(p, axis=-1, keepdims=True), approx=True)

    o_ref[0, 0] = jnp.dot(p.astype(jnp.bfloat16), v,
                          preferred_element_type=jnp.float32).astype(o_ref.dtype)


# ---------------------------------------------------------------------------
# Kernel 3: output projection + residual/LN1 + FFN + residual/LN2 per q-block
# ---------------------------------------------------------------------------
def _outproj_ffn_kernel(x_ref, ctx_ref, wo_ref, bo_ref, ln1g_ref, ln1b_ref,
                        w1_ref, b1_ref, w2_ref, b2_ref, ln2g_ref, ln2b_ref,
                        o_ref):
    x = x_ref[0]                                 # (TQ, D) f32
    ctx = ctx_ref[0]                             # (TQ, D) bf16, heads concat'd

    attn = jnp.dot(ctx, wo_ref[...],
                   preferred_element_type=jnp.float32) + bo_ref[...]
    x1 = _layer_norm(x + attn, ln1g_ref[...], ln1b_ref[...])

    h1 = jnp.dot(x1.astype(jnp.bfloat16), w1_ref[...],
                 preferred_element_type=jnp.float32) + b1_ref[...]
    h1 = jnp.maximum(h1, 0.0)                    # ReLU
    ff = jnp.dot(h1.astype(jnp.bfloat16), w2_ref[...],
                 preferred_element_type=jnp.float32) + b2_ref[...]
    o_ref[0] = _layer_norm(x1 + ff, ln2g_ref[...], ln2b_ref[...])


# ---------------------------------------------------------------------------
# Kernel 4: final (tied-weight) vocab projection, lane-dense padded V
# ---------------------------------------------------------------------------
def _final_linear_kernel(x_ref, w_ref, b_ref, o_ref):
    o_ref[...] = (jnp.dot(x_ref[...].astype(jnp.bfloat16), w_ref[...],
                          preferred_element_type=jnp.float32) + b_ref[...])


# ---------------------------------------------------------------------------
# One transformer encoder layer (post-norm, ReLU FFN)
# ---------------------------------------------------------------------------
def transformer_layer(x, lp, mask, num_heads):
    B, T, D = x.shape
    H = num_heads
    hd = D // H
    FF = lp['w1_t'].shape[1]
    vmem = _vmem_limit_bytes()

    TQ = _pick_tile(T, (256, 128, 64, 32, 16, 8))
    nq = T // TQ

    # --- 1. fused QKV projection over flattened rows -------------------------
    R = B * T
    TR = _pick_tile(R, (512, 256, 128, 64, 32, 16, 8))
    qkv = pl.pallas_call(
        _qkv_proj_kernel,
        out_shape=jax.ShapeDtypeStruct((R, 3 * D), jnp.bfloat16),
        grid=(R // TR,),
        in_specs=[
            pl.BlockSpec((TR, D), lambda r: (r, 0)),
            _const_spec((D, 3 * D)),             # Wqkv^T (bf16)
            _const_spec((1, 3 * D)),             # bqkv
        ],
        out_specs=pl.BlockSpec((TR, 3 * D), lambda r: (r, 0)),
        compiler_params=pltpu.CompilerParams(
            dimension_semantics=("parallel",), vmem_limit_bytes=vmem),
    )(x.reshape(R, D), lp['w_qkv_t'], lp['b_qkv'])

    # head-leading relayout (wrapper-side XLA layout plumbing, not compute)
    qkv = qkv.reshape(B, T, 3, H, hd)
    qkv = jnp.transpose(qkv, (2, 0, 3, 1, 4))    # (3, B, H, T, hd)
    q, k, v = qkv[0], qkv[1], qkv[2]             # each (B, H, T, hd) bf16

    # --- 2. attention per (batch, head, q-block) ------------------------------
    ctx = pl.pallas_call(
        _attention_kernel,
        out_shape=jax.ShapeDtypeStruct((B, H, T, hd), jnp.bfloat16),
        grid=(B, H, nq),
        in_specs=[
            pl.BlockSpec((1, 1, TQ, hd), lambda b, h, qi: (b, h, qi, 0)),
            pl.BlockSpec((1, 1, T, hd), lambda b, h, qi: (b, h, 0, 0)),
            pl.BlockSpec((1, 1, T, hd), lambda b, h, qi: (b, h, 0, 0)),
            pl.BlockSpec((TQ, T), lambda b, h, qi: (qi, 0)),   # causal bias
        ],
        out_specs=pl.BlockSpec((1, 1, TQ, hd), lambda b, h, qi: (b, h, qi, 0)),
        compiler_params=pltpu.CompilerParams(
            dimension_semantics=("parallel", "parallel", "parallel"),
            vmem_limit_bytes=vmem),
    )(q, k, v, mask)

    # head concat (wrapper-side): (B, H, T, hd) -> (B, T, D)
    ctx = jnp.transpose(ctx, (0, 2, 1, 3)).reshape(B, T, D)

    # --- 3. output projection + residual/LN + FFN + residual/LN ---------------
    out = pl.pallas_call(
        _outproj_ffn_kernel,
        out_shape=jax.ShapeDtypeStruct((B, T, D), jnp.float32),
        grid=(B, nq),
        in_specs=[
            pl.BlockSpec((1, TQ, D), lambda b, qi: (b, qi, 0)),   # x (residual)
            pl.BlockSpec((1, TQ, D), lambda b, qi: (b, qi, 0)),   # context
            _const_spec((D, D)),                                  # Wo^T (bf16)
            _const_spec((1, D)),                                  # bo
            _const_spec((1, D)), _const_spec((1, D)),             # ln1 g/b
            _const_spec((D, FF)), _const_spec((1, FF)),           # W1^T, b1
            _const_spec((FF, D)), _const_spec((1, D)),            # W2^T, b2
            _const_spec((1, D)), _const_spec((1, D)),             # ln2 g/b
        ],
        out_specs=pl.BlockSpec((1, TQ, D), lambda b, qi: (b, qi, 0)),
        compiler_params=pltpu.CompilerParams(
            dimension_semantics=("parallel", "parallel"),
            vmem_limit_bytes=vmem),
    )(x, ctx, lp['wo_t'], lp['bo'], lp['ln1_g'], lp['ln1_b'],
      lp['w1_t'], lp['b1'], lp['w2_t'], lp['b2'], lp['ln2_g'], lp['ln2_b'])
    return out


# ---------------------------------------------------------------------------
# Final vocab projection (tied weight), padded V, lane-dense output tiles
# ---------------------------------------------------------------------------
def final_linear(x, w_vocab_t, out_bias, vocab_size):
    B, T, D = x.shape
    Vp = w_vocab_t.shape[1]                      # already padded to 128-multiple
    R = B * T
    x2 = x.reshape(R, D)
    vmem = _vmem_limit_bytes()
    big_vmem = vmem > 64 * 1024 * 1024
    TR = _pick_tile(R, (512, 256, 128, 64, 32, 16, 8))
    tv_cands = (2048, 1024, 512, 256, 128) if big_vmem else (1024, 512, 256, 128)
    TV = _pick_tile(Vp, tv_cands)

    out = pl.pallas_call(
        _final_linear_kernel,
        out_shape=jax.ShapeDtypeStruct((R, Vp), jnp.float32),
        grid=(R // TR, Vp // TV),
        in_specs=[
            pl.BlockSpec((TR, D), lambda r, v: (r, 0)),
            pl.BlockSpec((D, TV), lambda r, v: (0, v)),
            pl.BlockSpec((1, TV), lambda r, v: (0, v)),
        ],
        out_specs=pl.BlockSpec((TR, TV), lambda r, v: (r, v)),
        compiler_params=pltpu.CompilerParams(
            dimension_semantics=("parallel", "parallel"),
            vmem_limit_bytes=vmem),
    )(x2, w_vocab_t, out_bias)
    return out.reshape(B, T, Vp)[:, :, :vocab_size]


# ---------------------------------------------------------------------------
# Parameter init (deterministic, synthetic, PyTorch layout)
# ---------------------------------------------------------------------------
def init_params(key, vocab_size, config):
    D = config['channels']
    FF = 4 * D
    ks = jax.random.split(key, 4)

    def normal(k, shape, std):
        return (std * jax.random.normal(k, shape)).astype(jnp.float32)

    params = {
        # tied embedding / output-projection weight, init N(0, 1/sqrt(D))
        'tok_emb': normal(ks[0], (vocab_size, D), 1.0 / D ** 0.5),
        'pos_emb': normal(ks[1], (config['max_context_length'], D), 1.0),
        'out_bias': jnp.zeros((vocab_size,), jnp.float32),
        'layers': [],
    }
    for layer_idx in range(config['num_transformer_blocks']):
        lk = jax.random.split(jax.random.fold_in(key, 100 + layer_idx), 4)
        params['layers'].append({
            'wqkv': normal(lk[0], (3 * D, D), (1.0 / D) ** 0.5),   # [Wq;Wk;Wv]
            'bqkv': jnp.zeros((3 * D,), jnp.float32),
            'wo': normal(lk[1], (D, D), (1.0 / D) ** 0.5),
            'bo': jnp.zeros((D,), jnp.float32),
            'ln1_g': jnp.ones((D,), jnp.float32),
            'ln1_b': jnp.zeros((D,), jnp.float32),
            'w1': normal(lk[2], (FF, D), (1.0 / D) ** 0.5),
            'b1': jnp.zeros((FF,), jnp.float32),
            'w2': normal(lk[3], (D, FF), (1.0 / FF) ** 0.5),
            'b2': jnp.zeros((D,), jnp.float32),
            'ln2_g': jnp.ones((D,), jnp.float32),
            'ln2_b': jnp.zeros((D,), jnp.float32),
        })
    return params


def prepare_params(params):
    """One-time setup-side re-layout: transpose, bf16 cast, vocab pad.
    Hoisted OUT of the forward path (called once at model build time)."""
    V, D = params['tok_emb'].shape
    bf = lambda a: a.astype(jnp.bfloat16)
    row = lambda a: a.reshape(1, -1).astype(jnp.float32)

    Vp = ((V + _LANE - 1) // _LANE) * _LANE      # pad vocab to lane multiple
    w_vocab_t = params['tok_emb'].T              # (D, V) tied weight
    out_bias = params['out_bias']
    if Vp != V:
        w_vocab_t = jnp.pad(w_vocab_t, ((0, 0), (0, Vp - V)))
        out_bias = jnp.pad(out_bias, (0, Vp - V))

    prepped = {
        'tok_emb': params['tok_emb'],
        'pos_emb': params['pos_emb'],
        'w_vocab_t': bf(w_vocab_t),              # (D, Vp)
        'out_bias': row(out_bias),               # (1, Vp)
        'vocab_size': V,
        'layers': [],
    }
    for lp in params['layers']:
        prepped['layers'].append({
            'w_qkv_t': bf(lp['wqkv'].T),         # (D, 3D) fused QKV weight
            'b_qkv': row(lp['bqkv']),            # (1, 3D)
            'wo_t': bf(lp['wo'].T),              # (D, D)
            'bo': row(lp['bo']),
            'ln1_g': row(lp['ln1_g']), 'ln1_b': row(lp['ln1_b']),
            'w1_t': bf(lp['w1'].T),              # (D, FF)
            'b1': row(lp['b1']),
            'w2_t': bf(lp['w2'].T),              # (FF, D)
            'b2': row(lp['b2']),
            'ln2_g': row(lp['ln2_g']), 'ln2_b': row(lp['ln2_b']),
        })
    return prepped


def movie_gpt_forward(prepped, tokens, config):
    B, T = tokens.shape
    H = config['num_heads']

    # embedding gathers (glue, plain JAX)
    x = (prepped['tok_emb'][tokens]
         + prepped['pos_emb'][:T][None, :, :]).astype(jnp.float32)

    # causal additive bias (== generate_square_subsequent_mask[:T,:T]), hoisted
    r = jnp.arange(T)[:, None]
    c = jnp.arange(T)[None, :]
    mask = jnp.where(c <= r, 0.0, NEG_INF).astype(jnp.float32)

    for lp in prepped['layers']:
        x = transformer_layer(x, lp, mask, H)
    return final_linear(x, prepped['w_vocab_t'], prepped['out_bias'],
                        prepped['vocab_size'])


if __name__ == "__main__":
    vocab_size = 64
    config = dict(channels=32, num_heads=4, max_context_length=16,
                  context_length=8, num_transformer_blocks=2)
    B, T = 2, config['context_length']

    key = jax.random.PRNGKey(0)
    k_tok, k_par = jax.random.split(key)
    tokens = jax.random.randint(k_tok, (B, T), 0, vocab_size, dtype=jnp.int32)
    params = init_params(k_par, vocab_size, config)
    prepped = prepare_params(params)             # hoisted out of forward

    logits = movie_gpt_forward(prepped, tokens, config)
    jax.block_until_ready(logits)
    assert logits.shape == (B, T, vocab_size)
    assert bool(jnp.all(jnp.isfinite(logits)))
    print("KERNEL_OK")
</pallas_src>

<mosaic_0001>
module attributes {stable_mosaic.version = 11 : i64} {
  func.func @_probe_copy_kernel(%arg0: i32, %arg1: memref<8x128xf32, #tpu.memory_space<vmem>>, %arg2: memref<8x128xf32, #tpu.memory_space<vmem>>) attributes {dimension_semantics = [#tpu.dimension_semantics<arbitrary>], iteration_bounds = array<i64: 1>, scalar_prefetch = 0 : i64, scratch_operands = 0 : i64, tpu.core_type = #tpu.core_type<tc>, window_params = [{pipeline_mode = #tpu.pipeline_mode<synchronous>, transform_indices = @transform_0, window_bounds = array<i64: 8, 128>}, {pipeline_mode = #tpu.pipeline_mode<synchronous>, transform_indices = @transform_1, window_bounds = array<i64: 8, 128>}]} {
    %c0 = arith.constant 0 : index
    %c0_0 = arith.constant 0 : index
    %0 = vector.load %arg1[%c0, %c0_0] : memref<8x128xf32, #tpu.memory_space<vmem>>, vector<8x128xf32>
    %c0_1 = arith.constant 0 : index
    %c0_2 = arith.constant 0 : index
    %1 = vector.load %arg2[%c0_1, %c0_2] : memref<8x128xf32, #tpu.memory_space<vmem>>, vector<8x128xf32>
    tpu.vector_store %arg2[%c0_1, %c0_2], %0 {strides = array<i32>} : memref<8x128xf32, #tpu.memory_space<vmem>>, vector<8x128xf32>,
    return
  }
  func.func @transform_0(%arg0: i32) -> (i32, i32) {
    %c0_i32 = arith.constant 0 : i32
    %c0_i32_0 = arith.constant 0 : i32
    %c0_i32_1 = arith.constant 0 : i32
    return %c0_i32, %c0_i32_0 : i32, i32
  }
  func.func @transform_1(%arg0: i32) -> (i32, i32) {
    %c0_i32 = arith.constant 0 : i32
    %c0_i32_0 = arith.constant 0 : i32
    %c0_i32_1 = arith.constant 0 : i32
    return %c0_i32, %c0_i32_0 : i32, i32
  }
}

module attributes {stable_mosaic.version = 11 : i64} {
  func.func @_qkv_proj_kernel(%arg0: i32, %arg1: memref<16x32xf32, #tpu.memory_space<vmem>>, %arg2: memref<32x96xbf16, #tpu.memory_space<vmem>>, %arg3: memref<1x96xf32, #tpu.memory_space<vmem>>, %arg4: memref<16x96xbf16, #tpu.memory_space<vmem>>) attributes {dimension_semantics = [#tpu.dimension_semantics<parallel>], iteration_bounds = array<i64: 1>, scalar_prefetch = 0 : i64, scratch_operands = 0 : i64, tpu.core_type = #tpu.core_type<tc>, window_params = [{transform_indices = @transform_0, window_bounds = array<i64: 16, 32>}, {pipeline_mode = #tpu.pipeline_mode<synchronous>, transform_indices = @transform_1, window_bounds = array<i64: 32, 96>}, {pipeline_mode = #tpu.pipeline_mode<synchronous>, transform_indices = @transform_2, window_bounds = array<i64: 1, 96>}, {transform_indices = @transform_3, window_bounds = array<i64: 16, 96>}]} {
    %c0 = arith.constant 0 : index
    %c0_0 = arith.constant 0 : index
    %0 = vector.load %arg1[%c0, %c0_0] : memref<16x32xf32, #tpu.memory_space<vmem>>, vector<16x32xf32>
    %1 = arith.truncf %0 : vector<16x32xf32> to vector<16x32xbf16>
    %c0_1 = arith.constant 0 : index
    %c0_2 = arith.constant 0 : index
    %2 = vector.load %arg2[%c0_1, %c0_2] : memref<32x96xbf16, #tpu.memory_space<vmem>>, vector<32x96xbf16>
    %cst = arith.constant dense<0.000000e+00> : vector<16x96xf32>
    %3 = tpu.matmul %1, %2, %cst {dimension_numbers = #tpu.dot_dimension_numbers<[1], [0], [0], [1], [0, 0, 1, 1], [], []>} : vector<16x32xbf16>, vector<32x96xbf16>, vector<16x96xf32> -> vector<16x96xf32>
    %c0_3 = arith.constant 0 : index
    %c0_4 = arith.constant 0 : index
    %4 = vector.load %arg3[%c0_3, %c0_4] : memref<1x96xf32, #tpu.memory_space<vmem>>, vector<1x96xf32>
    %5 = vector.broadcast %4 : vector<1x96xf32> to vector<16x96xf32>
    %6 = arith.addf %3, %5 : vector<16x96xf32>
    %7 = arith.truncf %6 : vector<16x96xf32> to vector<16x96xbf16>
    %c0_5 = arith.constant 0 : index
    %c0_6 = arith.constant 0 : index
    %8 = vector.load %arg4[%c0_5, %c0_6] : memref<16x96xbf16, #tpu.memory_space<vmem>>, vector<16x96xbf16>
    tpu.vector_store %arg4[%c0_5, %c0_6], %7 {strides = array<i32>} : memref<16x96xbf16, #tpu.memory_space<vmem>>, vector<16x96xbf16>,
    return
  }
  func.func @transform_0(%arg0: i32) -> (i32, i32) {
    %c0_i32 = arith.constant 0 : i32
    %c0_i32_0 = arith.constant 0 : i32
    return %arg0, %c0_i32 : i32, i32
  }
  func.func @transform_1(%arg0: i32) -> (i32, i32) {
    %c0_i32 = arith.constant 0 : i32
    %c0_i32_0 = arith.constant 0 : i32
    %c0_i32_1 = arith.constant 0 : i32
    return %c0_i32, %c0_i32_0 : i32, i32
  }
  func.func @transform_2(%arg0: i32) -> (i32, i32) {
    %c0_i32 = arith.constant 0 : i32
    %c0_i32_0 = arith.constant 0 : i32
    %c0_i32_1 = arith.constant 0 : i32
    return %c0_i32, %c0_i32_0 : i32, i32
  }
  func.func @transform_3(%arg0: i32) -> (i32, i32) {
    %c0_i32 = arith.constant 0 : i32
    %c0_i32_0 = arith.constant 0 : i32
    return %arg0, %c0_i32 : i32, i32
  }
}

</mosaic_0001>

<bundles_post_ra>
// kernel: tpu_custom_call.1
= control target key start
LH: loop header
LB: loop body
LE: loop exit
PB: predicated region body
PF: predicated region fallthrough
CT: control target
= control target key end

     0   :  { %6 = vsyncpa [#allocation3], 0  ;;  %s124_s0 = inlined_call_operand.hbm [shape: f32[8,128], index: 0, kind: input, shape index: {}]   ;;  %s125_s1 = inlined_call_operand.hbm [shape: f32[8,128], index: 1, kind: output, shape index: {}]  }
   0x1   :  { %7 = vsyncpa [#allocation4], 0  ;;  %s88_s6 = smov [#allocation2]   ;;  %s40_s10 = scalar_lea.hbm %s124_s0, 128 }
   0x2   :  { %s14_s7 = sshll.u32 %s88_s6, 4  ;;  %p41_p0 = scmp.ne.s32.totalorder %s124_s0, %s40_s10  ;;  %s15_s7 = int_to_ptr.vmem [resolvable:$true] %s14_s7 }
   0x3   :  { %p44_p1 = scmp.lt.u32.totalorder %s40_s10, %s124_s0 }
   0x5   :  { %p46_p2 = pnand %p44_p1, %p41_p0 }
   0x7   :  { %49 = shalt.err (!%p46_p2)
}
   0x8   :  { %s50_s15 = scalar_lea.vmem %s15_s7, 128  ;;  %p55_p4 = scmp.lt.s32.totalorder %s15_s7, %s15_s7 }
   0x9   :  { %p51_p3 = scmp.ne.s32.totalorder %s15_s7, %s50_s15  ;;  %p56_p5 = scmp.lt.s32.totalorder %s50_s15, %s50_s15 }
   0xb   :  { %p57_p6 = por %p56_p5, %p55_p4 }
   0xd   :  { %p58_p7 = pnand %p57_p6, %p51_p3 }
   0xf   :  { %61 = shalt.err (!%p58_p7)
}
  0x10   :  { %17 = dma.hbm_to_vmem [thread:$0]  %s124_s0, 128, %s15_s7, [#allocation3]  }
  0x11   :  { %84 = dma.done.wait [#allocation3], 128  }
  0x12   :  { %85 = vsyncadd [#allocation3], 4294967168  ;;  %s89_s18 = smov [#allocation5]   ;;  %v21_v0 = vld [vmem:[#allocation2] sm:$0xff] }
  0x13   :  { %s29_s19 = sshll.u32 %s89_s18, 4  ;;  %22 = vst [vmem:[#allocation5] sm:$0xff] %v21_v0  ;;  %s30_s19 = int_to_ptr.vmem [resolvable:$true] %s29_s19 }
  0x14   :  { %s62_s20 = scalar_lea.vmem %s30_s19, 128  ;;  %p67_p9 = scmp.lt.s32.totalorder %s30_s19, %s30_s19 }
  0x15   :  { %p63_p8 = scmp.ne.s32.totalorder %s30_s19, %s62_s20  ;;  %p68_p10 = scmp.lt.s32.totalorder %s62_s20, %s62_s20 }
  0x17   :  { %p69_p11 = por %p68_p10, %p67_p9 }
  0x19   :  { %p70_p12 = pnand %p69_p11, %p63_p8 }
  0x1b   :  { %73 = shalt.err (!%p70_p12)
}
  0x1c   :  { %s74_s23 = scalar_lea.hbm %s125_s1, 128 }
  0x1d   :  { %p75_p13 = scmp.ne.s32.totalorder %s125_s1, %s74_s23  ;;  %p78_p0 = scmp.lt.u32.totalorder %s74_s23, %s125_s1 }
  0x1f   :  { %p80_p1 = pnand %p78_p0, %p75_p13 }
  0x21   :  { %83 = shalt.err (!%p80_p1)
}
  0x22   :  { %32 = dma.vmem_to_hbm [thread:$0]  %s30_s19, 128, %s125_s1, [#allocation4]  }
  0x23   :  { %86 = dma.done.wait [#allocation4], 128  }
  0x24   :  { %87 = vsyncadd [#allocation4], 4294967168 }
  0x25   :  { %36 = vsyncpa [#allocation3], 1 }
  0x26   :  { %37 = vsyncpa [#allocation4], 1 }

// kernel: tpu_custom_call.1
= control target key start
LH: loop header
LB: loop body
LE: loop exit
PB: predicated region body
PF: predicated region fallthrough
CT: control target
= control target key end

     0   :  { %8 = vsyncpa [#allocation3], 0  ;;  %s320_s0 = inlined_call_operand.hbm [shape: f32[16,32], index: 0, kind: input, shape index: {}]   ;;  %s321_s1 = inlined_call_operand.hbm [shape: bf16[32,96], index: 1, kind: input, shape index: {}]   ;;  %s322_s2 = inlined_call_operand.vmem [shape: f32[1,96], index: 2, kind: input, shape index: {}]   ;;  %s323_s3 = inlined_call_operand.hbm [shape: bf16[16,96], index: 3, kind: output, shape index: {}]  }
   0x1   :  { %9 = vsyncpa [#allocation6], 0 }
   0x2   :  { %10 = vsyncpa [#allocation4], 0  ;;  %s246_s12 = smov [#allocation2]   ;;  %s174_s16 = scalar_lea.hbm %s320_s0, 256 }
   0x3   :  { %s16_s13 = sshll.u32 %s246_s12, 4  ;;  %p175_p0 = scmp.ne.s32.totalorder %s320_s0, %s174_s16  ;;  %s17_s13 = int_to_ptr.vmem [resolvable:$true] %s16_s13 }
   0x4   :  { %p178_p1 = scmp.lt.u32.totalorder %s174_s16, %s320_s0 }
   0x6   :  { %p180_p2 = pnand %p178_p1, %p175_p0 }
   0x8   :  { %183 = shalt.err (!%p180_p2)
}
   0x9   :  { %s184_s21 = scalar_lea.vmem %s17_s13, 256  ;;  %p189_p4 = scmp.lt.s32.totalorder %s17_s13, %s17_s13 }
   0xa   :  { %p185_p3 = scmp.ne.s32.totalorder %s17_s13, %s184_s21  ;;  %p190_p5 = scmp.lt.s32.totalorder %s184_s21, %s184_s21 }
   0xc   :  { %p191_p6 = por %p190_p5, %p189_p4 }
   0xe   :  { %p192_p7 = pnand %p191_p6, %p185_p3 }
  0x10   :  { %195 = shalt.err (!%p192_p7)
}
  0x11   :  { %s247_s22 = smov 128   ;;  %s248_s23 = smov 8  }
  0x12   :  { %22 = dma.hbm_to_vmem [thread:$0]  %s320_s0, 256, %s17_s13, [#allocation3], %s247_s22, %s247_s22, %s248_s23  }
  0x13   :  { %s249_s26 = smov [#allocation5]   ;;  %s196_s30 = scalar_lea.hbm %s321_s1, 256 }
  0x14   :  { %s28_s27 = sshll.u32 %s249_s26, 4  ;;  %p197_p8 = scmp.ne.s32.totalorder %s321_s1, %s196_s30  ;;  %s29_s27 = int_to_ptr.vmem [resolvable:$true] %s28_s27 }
  0x15   :  { %p200_p9 = scmp.lt.u32.totalorder %s196_s30, %s321_s1 }
  0x17   :  { %p202_p10 = pnand %p200_p9, %p197_p8 }
  0x19   :  { %205 = shalt.err (!%p202_p10)
}
  0x1a   :  { %s206_s8 = scalar_lea.vmem %s29_s27, 256  ;;  %p211_p12 = scmp.lt.s32.totalorder %s29_s27, %s29_s27 }
  0x1b   :  { %p207_p11 = scmp.ne.s32.totalorder %s29_s27, %s206_s8  ;;  %p212_p13 = scmp.lt.s32.totalorder %s206_s8, %s206_s8 }
  0x1d   :  { %p213_p0 = por %p212_p13, %p211_p12 }
  0x1f   :  { %p214_p1 = pnand %p213_p0, %p207_p11 }
  0x21   :  { %217 = shalt.err (!%p214_p1)
}
  0x22   :  { %s250_s0 = smov 64   ;;  %s251_s9 = smov 4  }
  0x23   :  { %34 = dma.hbm_to_vmem [thread:$0]  %s321_s1, 256, %s29_s27, [#allocation6], %s250_s0, %s250_s0, %s251_s9  }
  0x24   :  { %240 = dma.done.wait [#allocation3], 256  }
  0x25   :  { %241 = vsyncadd [#allocation3], 4294967040 }
  0x26   :  { %242 = dma.done.wait [#allocation6], 256  }
  0x27   :  { %243 = vsyncadd [#allocation6], 4294967040  ;;  %v252_v0 = vmov 0.0   ;;  %vm253_vm0 = vmmov 0   ;;  %v172_v1 = vld [vmem:[#allocation5] sm:$0xff]   ;;  %v173_v2 = vld [vmem:[#allocation5 + $0x8] sm:$0xff]  }
  0x28   :  { %155 = vmatprep.subr.bf16.mxu0 %v252_v0  ;;  %159 = vmatprep.mubr.msk.bf16.mxu0 %vm253_vm0, %v252_v0  ;;  %v44_v3 = vld [vmem:[#allocation2] sm:$0xff]  ;;  %v45_v4 = vld [vmem:[#allocation2 + $0x8] sm:$0xff]  ;;  %vm70_vm1 = vcmask 261120   ;;  %vm123_vm2 = vcmask 781312   ;;  %s254_s13 = smov [#allocation7]  }
  0x29   :  { %156 = vmatpush3.bf16.msra.mxu0 %v172_v1  ;;  %v46_v5 = vpack.c.bf16 %v45_v4, %v44_v3  ;;  %v144_v6 = vld [vmem:[%s322_s2] ss:$0 sm:$0xff]  ;;  %s131_s14 = sshll.u32 %s254_s13, 4  ;;  %s132_s14 = int_to_ptr.vmem [resolvable:$true] %s131_s14 }
  0x2a   :  { %157 = vmatprep.subr.bf16.mxu0 %v252_v0  ;;  %s218_s15 = scalar_lea.vmem %s132_s14, 128  ;;  %p223_p3 = scmp.lt.s32.totalorder %s132_s14, %s132_s14 }
  0x2b   :  { %p219_p2 = scmp.ne.s32.totalorder %s132_s14, %s218_s15  ;;  %p224_p4 = scmp.lt.s32.totalorder %s218_s15, %s218_s15 }
  0x2d   :  { %158 = vmatpush3.bf16.msra.mxu0 %v173_v2  ;;  %p225_p5 = por %p224_p4, %p223_p3 }
  0x2f   :  { %p226_p6 = pnand %p225_p5, %p219_p2 }
  0x30   :  { %160 = vmatmul.mubr.msk.bf16.vlgmr.msra.gmra.mrb[0].mxu0 %vm70_vm1, %v46_v5 }
 0x103   :  { %v108_v7 = vpop.f32.mrb[0].mxu0 }
 0x104   :  { %v109_v8 = vadd.f32 %v144_v6, %v108_v7  ;;  %v161_v9 = vpop.f32.mrb[1].mxu0 }
 0x105   :  { %v111_v10 = vpop.f32.mrb[2].mxu0 }
 0x106   :  { %v150_v11 = vpack.c.bf16 %v109_v8, %v109_v8  ;;  %v112_v12 = vadd.f32 %v144_v6, %v111_v10  ;;  %v162_v13 = vpop.f32.mrb[3].mxu0 }
 0x108   :  { %v151_v14 = vpack.c.bf16 %v112_v12, %v112_v12  ;;  %124 = vst.msk [vmem:[#allocation7] sm:$0xf] %vm123_vm2, %v150_v11 }
 0x10a   :  { %125 = vst.msk [vmem:[#allocation7 + $0x4] sm:$0xf] %vm123_vm2, %v151_v14 }
 0x10b   :  { %229 = shalt.err (!%p226_p6)
}
 0x10c   :  { %s230_s17 = scalar_lea.hbm %s323_s3, 128 }
 0x10d   :  { %p231_p7 = scmp.ne.s32.totalorder %s323_s3, %s230_s17  ;;  %p234_p8 = scmp.lt.u32.totalorder %s230_s17, %s323_s3 }
 0x10f   :  { %p236_p9 = pnand %p234_p8, %p231_p7 }
 0x111   :  { %239 = shalt.err (!%p236_p9)
}
 0x112   :  { %137 = dma.vmem_to_hbm [thread:$0]  %s132_s14, 128, %s323_s3, [#allocation4], %s250_s0, %s250_s0, %s251_s9  }
 0x113   :  { %244 = dma.done.wait [#allocation4], 128  }
 0x114   :  { %245 = vsyncadd [#allocation4], 4294967168 }
 0x115   :  { %141 = vsyncpa [#allocation3], 1 }
 0x116   :  { %142 = vsyncpa [#allocation6], 1 }
 0x117   :  { %143 = vsyncpa [#allocation4], 1 }

</bundles_post_ra>
